<compile_context>
chip_gen: v7x
topology: tpu7x:2x2x1
jax: 0.10.0
libtpu: 0.0.40
codegen_flags: <defaults>
</compile_context>

<pallas_src>
import functools

import jax
import jax.numpy as jnp
from jax import lax
from jax.experimental import pallas as pl
from jax.experimental.pallas import tpu as pltpu


def _peg_kernel(x_ref, w_ref, b_ref, m_ref, o_ref, *, W):
    # x_ref: (tc, HW)  channel tile, channels on sublanes, flattened H*W on lanes
    # w_ref: (tc, 9)   depthwise 3x3 weights per channel, taps row-major (dh*3+dw)
    # b_ref: (tc, 1)   per-channel bias
    # m_ref: (4, HW)   halo masks: [col>=1, col<=W-2, row>=1, row<=H-2] (0/1 f32)
    # o_ref: (tc, HW)
    hw = x_ref.shape[-1]
    x = x_ref[...].astype(jnp.float32)        # single upcast (bf16-safe)
    w = w_ref[...]                            # already f32
    b = b_ref[...]                            # already f32
    m = m_ref[...]

    left_ok = m[0:1, :]                       # col >= 1   (tap from w-1 valid)
    right_ok = m[1:2, :]                      # col <= W-2 (tap from w+1 valid)
    up_ok = m[2:3, :]                         # row >= 1   (tap from h-1 valid)
    down_ok = m[3:4, :]                       # row <= H-2 (tap from h+1 valid)

    # Shared horizontal taps: lane rotations on the XLU, halo zeroed by the
    # precomputed masks (a single vmul each).
    xL = pltpu.roll(x, 1, axis=1) * left_ok            # xL[i] = x[i-1]
    xR = pltpu.roll(x, hw - 1, axis=1) * right_ok      # xR[i] = x[i+1]

    # Per-kernel-row horizontal sums; bias and the +x residual fold into the
    # center row via (w_center + 1).
    row0 = w[:, 0:1] * xL + w[:, 1:2] * x + w[:, 2:3] * xR
    row1 = w[:, 3:4] * xL + (w[:, 4:5] + 1.0) * x + w[:, 5:6] * xR + b
    row2 = w[:, 6:7] * xL + w[:, 7:8] * x + w[:, 8:9] * xR

    # Two vertical rolls of the row sums complete the 3x3 window.
    acc = row1
    acc = acc + pltpu.roll(row0, W % hw, axis=1) * up_ok          # from row h-1
    acc = acc + pltpu.roll(row2, (hw - W) % hw, axis=1) * down_ok  # from row h+1

    o_ref[...] = acc.astype(o_ref.dtype)


def _pick_channel_tile(B, C, H, W, dtype):
    """Channel tile choice: sublane-packing-aware candidates, vreg-live-set cap
    to avoid spill at large HW, 24 MiB per-step VMEM cap (v7x-safe), and a
    collapsed grid for small tensors (per-step overhead dominates there)."""
    HW = H * W
    itemsize = jnp.dtype(dtype).itemsize
    packing = 8 * max(1, 4 // itemsize)       # rows per sublane-vreg: 8 f32 / 16 bf16 / 32 i8

    cands = [c for c in (packing, 2 * packing, 4 * packing, 8 * packing, 16 * packing)
             if c <= C and C % c == 0]
    if C not in cands:
        cands.append(C)                       # full-extent block is always legal
    cands = sorted(set(cands))

    total_bytes = 2 * B * C * HW * itemsize   # one read + one write of x
    small = total_bytes < (2 << 20)

    live_cap_elems = 16 * 1024                # ~3 live f32 tiles well inside the 64-vreg file
    vmem_budget = 24 << 20                    # inside v7x's 32 MiB scoped default

    tc = cands[0]
    for c in cands[1:]:
        step_bytes = 4 * c * HW * itemsize    # 2x double-buffered input + output blocks
        if step_bytes > vmem_budget:
            break
        if (not small) and c * HW > live_cap_elems:
            break
        tc = c

    if small:
        # Tiny tensor: collapse the grid (overhead >> HBM time), but keep >= 2
        # parallel steps for v7x's two TensorCores (the batch axis usually does).
        tc = cands[-1]
        if B == 1:
            for c in reversed(cands):
                if C // c >= 2:
                    tc = c
                    break

    # TODO(synk): for very large HW additionally tile the flattened spatial axis
    # (needs a W+1 lane halo across chunks) instead of relying on the channel
    # tile alone.
    return tc


def peg_forward(x, weight, bias):
    """PEG forward. x: (B, C, H, W) NCHW; weight: (C, 1, 3, 3); bias: (C,)."""
    B, C, H, W = x.shape
    HW = H * W
    tc = _pick_channel_tile(B, C, H, W, x.dtype)

    # Free / tiny glue only: contiguous reshapes, no pad, no transpose.
    x_flat = x.reshape(B, C, HW)
    w_flat = weight.reshape(C, 9).astype(jnp.float32)
    b_flat = bias.reshape(C, 1).astype(jnp.float32)

    # Halo masks computed once in the wrapper (hoisted out of the kernel).
    idx = jnp.arange(HW, dtype=jnp.int32)
    col = idx % W
    row = idx // W
    masks = jnp.stack([
        (col >= 1).astype(jnp.float32),
        (col <= W - 2).astype(jnp.float32),
        (row >= 1).astype(jnp.float32),
        (row <= H - 2).astype(jnp.float32),
    ], axis=0)                                # (4, HW)

    kernel = functools.partial(_peg_kernel, W=W)
    # Channel tiles outer, batch inner: weight / bias / mask blocks (index
    # independent of b) are not re-DMA'd across the inner batch steps.
    grid = (C // tc, B)

    step_bytes = 4 * tc * HW * x.dtype.itemsize + 4 * (HW + tc * 10) * 4
    cp = dict(dimension_semantics=("parallel", "parallel"))
    if step_bytes > (8 << 20):                # only raise the scoped limit when needed
        cp["vmem_limit_bytes"] = min(int(step_bytes * 3 // 2), 28 << 20)

    out = pl.pallas_call(
        kernel,
        out_shape=jax.ShapeDtypeStruct((B, C, HW), x.dtype),
        grid_spec=pl.GridSpec(
            grid=grid,
            in_specs=[
                pl.BlockSpec((None, tc, HW), lambda ci, b: (b, ci, 0)),
                pl.BlockSpec((tc, 9), lambda ci, b: (ci, 0)),
                pl.BlockSpec((tc, 1), lambda ci, b: (ci, 0)),
                pl.BlockSpec((4, HW), lambda ci, b: (0, 0)),
            ],
            out_specs=pl.BlockSpec((None, tc, HW), lambda ci, b: (b, ci, 0)),
        ),
        compiler_params=pltpu.CompilerParams(**cp),
    )(x_flat, w_flat, b_flat, masks)

    return out.reshape(B, C, H, W)


def _peg_reference(x_nchw, weight, bias):
    """Pure-JAX reference: depthwise conv (groups=C) + bias + residual."""
    C = x_nchw.shape[1]
    y = lax.conv_general_dilated(
        x_nchw, weight,
        window_strides=(1, 1),
        padding=((1, 1), (1, 1)),
        dimension_numbers=("NCHW", "OIHW", "NCHW"),
        feature_group_count=C,
    )
    return y + bias.reshape(1, C, 1, 1) + x_nchw


if __name__ == "__main__":
    B, C, H, W = 2, 32, 16, 16  # hidden_size = 32

    key = jax.random.PRNGKey(0)
    kx, kw, kb = jax.random.split(key, 3)

    x = jax.random.normal(kx, (B, C, H, W), dtype=jnp.float32)
    # Deterministic parameter init (mimicking Conv2d's uniform init, fan_in = 1*3*3)
    bound = 1.0 / (3.0 * 3.0) ** 0.5
    weight = jax.random.uniform(kw, (C, 1, 3, 3), jnp.float32, -bound, bound)
    bias = jax.random.uniform(kb, (C,), jnp.float32, -bound, bound)

    out = jax.block_until_ready(peg_forward(x, weight, bias))
    ref = _peg_reference(x, weight, bias)

    assert out.shape == (B, C, H, W)
    assert jnp.allclose(out, ref, atol=1e-4, rtol=1e-4), "mismatch vs reference"

    print("KERNEL_OK")
</pallas_src>

<mosaic_0001>
module attributes {stable_mosaic.version = 11 : i64} {
  func.func @_peg_kernel(%arg0: i32, %arg1: i32, %arg2: memref<1x32x256xf32, #tpu.memory_space<vmem>>, %arg3: memref<32x9xf32, #tpu.memory_space<vmem>>, %arg4: memref<32x1xf32, #tpu.memory_space<vmem>>, %arg5: memref<4x256xf32, #tpu.memory_space<vmem>>, %arg6: memref<1x32x256xf32, #tpu.memory_space<vmem>>) attributes {dimension_semantics = [#tpu.dimension_semantics<parallel>, #tpu.dimension_semantics<parallel>], iteration_bounds = array<i64: 1, 2>, scalar_prefetch = 0 : i64, scratch_operands = 0 : i64, tpu.core_type = #tpu.core_type<tc>, window_params = [{transform_indices = @transform_0, window_bounds = array<i64: 1, 32, 256>}, {transform_indices = @transform_1, window_bounds = array<i64: 32, 9>}, {transform_indices = @transform_2, window_bounds = array<i64: 32, 1>}, {pipeline_mode = #tpu.pipeline_mode<synchronous>, transform_indices = @transform_3, window_bounds = array<i64: 4, 256>}, {transform_indices = @transform_4, window_bounds = array<i64: 1, 32, 256>}]} {
    %c0 = arith.constant 0 : index
    %c0_0 = arith.constant 0 : index
    %c0_1 = arith.constant 0 : index
    %0 = vector.load %arg2[%c0, %c0_0, %c0_1] : memref<1x32x256xf32, #tpu.memory_space<vmem>>, vector<1x32x256xf32>
    %1 = vector.shape_cast %0 : vector<1x32x256xf32> to vector<32x256xf32>
    %c0_2 = arith.constant 0 : index
    %c0_3 = arith.constant 0 : index
    %2 = vector.load %arg3[%c0_2, %c0_3] : memref<32x9xf32, #tpu.memory_space<vmem>>, vector<32x9xf32>
    %c0_4 = arith.constant 0 : index
    %c0_5 = arith.constant 0 : index
    %3 = vector.load %arg4[%c0_4, %c0_5] : memref<32x1xf32, #tpu.memory_space<vmem>>, vector<32x1xf32>
    %c0_6 = arith.constant 0 : index
    %c0_7 = arith.constant 0 : index
    %4 = vector.load %arg5[%c0_6, %c0_7] : memref<4x256xf32, #tpu.memory_space<vmem>>, vector<4x256xf32>
    %5 = vector.extract_strided_slice %4 {offsets = [0, 0], sizes = [1, 256], strides = [1, 1]} : vector<4x256xf32> to vector<1x256xf32>
    %6 = vector.extract_strided_slice %4 {offsets = [1, 0], sizes = [1, 256], strides = [1, 1]} : vector<4x256xf32> to vector<1x256xf32>
    %7 = vector.extract_strided_slice %4 {offsets = [2, 0], sizes = [1, 256], strides = [1, 1]} : vector<4x256xf32> to vector<1x256xf32>
    %8 = vector.extract_strided_slice %4 {offsets = [3, 0], sizes = [1, 256], strides = [1, 1]} : vector<4x256xf32> to vector<1x256xf32>
    %c1_i32 = arith.constant 1 : i32
    %9 = tpu.dynamic_rotate %1 by %c1_i32 dim 1 : vector<32x256xf32>, i32 -> vector<32x256xf32>
    %10 = vector.broadcast %5 : vector<1x256xf32> to vector<32x256xf32>
    %11 = arith.mulf %9, %10 : vector<32x256xf32>
    %c255_i32 = arith.constant 255 : i32
    %12 = tpu.dynamic_rotate %1 by %c255_i32 dim 1 : vector<32x256xf32>, i32 -> vector<32x256xf32>
    %13 = vector.broadcast %6 : vector<1x256xf32> to vector<32x256xf32>
    %14 = arith.mulf %12, %13 : vector<32x256xf32>
    %15 = vector.extract_strided_slice %2 {offsets = [0, 0], sizes = [32, 1], strides = [1, 1]} : vector<32x9xf32> to vector<32x1xf32>
    %16 = vector.broadcast %15 : vector<32x1xf32> to vector<32x256xf32>
    %17 = arith.mulf %16, %11 : vector<32x256xf32>
    %18 = vector.extract_strided_slice %2 {offsets = [0, 1], sizes = [32, 1], strides = [1, 1]} : vector<32x9xf32> to vector<32x1xf32>
    %19 = vector.broadcast %18 : vector<32x1xf32> to vector<32x256xf32>
    %20 = arith.mulf %19, %1 : vector<32x256xf32>
    %21 = arith.addf %17, %20 : vector<32x256xf32>
    %22 = vector.extract_strided_slice %2 {offsets = [0, 2], sizes = [32, 1], strides = [1, 1]} : vector<32x9xf32> to vector<32x1xf32>
    %23 = vector.broadcast %22 : vector<32x1xf32> to vector<32x256xf32>
    %24 = arith.mulf %23, %14 : vector<32x256xf32>
    %25 = arith.addf %21, %24 : vector<32x256xf32>
    %26 = vector.extract_strided_slice %2 {offsets = [0, 3], sizes = [32, 1], strides = [1, 1]} : vector<32x9xf32> to vector<32x1xf32>
    %27 = vector.broadcast %26 : vector<32x1xf32> to vector<32x256xf32>
    %28 = arith.mulf %27, %11 : vector<32x256xf32>
    %29 = vector.extract_strided_slice %2 {offsets = [0, 4], sizes = [32, 1], strides = [1, 1]} : vector<32x9xf32> to vector<32x1xf32>
    %cst = arith.constant 1.000000e+00 : f32
    %30 = vector.broadcast %cst : f32 to vector<32x1xf32>
    %31 = arith.addf %29, %30 : vector<32x1xf32>
    %32 = vector.broadcast %31 : vector<32x1xf32> to vector<32x256xf32>
    %33 = arith.mulf %32, %1 : vector<32x256xf32>
    %34 = arith.addf %28, %33 : vector<32x256xf32>
    %35 = vector.extract_strided_slice %2 {offsets = [0, 5], sizes = [32, 1], strides = [1, 1]} : vector<32x9xf32> to vector<32x1xf32>
    %36 = vector.broadcast %35 : vector<32x1xf32> to vector<32x256xf32>
    %37 = arith.mulf %36, %14 : vector<32x256xf32>
    %38 = arith.addf %34, %37 : vector<32x256xf32>
    %39 = vector.broadcast %3 : vector<32x1xf32> to vector<32x256xf32>
    %40 = arith.addf %38, %39 : vector<32x256xf32>
    %41 = vector.extract_strided_slice %2 {offsets = [0, 6], sizes = [32, 1], strides = [1, 1]} : vector<32x9xf32> to vector<32x1xf32>
    %42 = vector.broadcast %41 : vector<32x1xf32> to vector<32x256xf32>
    %43 = arith.mulf %42, %11 : vector<32x256xf32>
    %44 = vector.extract_strided_slice %2 {offsets = [0, 7], sizes = [32, 1], strides = [1, 1]} : vector<32x9xf32> to vector<32x1xf32>
    %45 = vector.broadcast %44 : vector<32x1xf32> to vector<32x256xf32>
    %46 = arith.mulf %45, %1 : vector<32x256xf32>
    %47 = arith.addf %43, %46 : vector<32x256xf32>
    %48 = vector.extract_strided_slice %2 {offsets = [0, 8], sizes = [32, 1], strides = [1, 1]} : vector<32x9xf32> to vector<32x1xf32>
    %49 = vector.broadcast %48 : vector<32x1xf32> to vector<32x256xf32>
    %50 = arith.mulf %49, %14 : vector<32x256xf32>
    %51 = arith.addf %47, %50 : vector<32x256xf32>
    %c16_i32 = arith.constant 16 : i32
    %52 = tpu.dynamic_rotate %25 by %c16_i32 dim 1 : vector<32x256xf32>, i32 -> vector<32x256xf32>
    %53 = vector.broadcast %7 : vector<1x256xf32> to vector<32x256xf32>
    %54 = arith.mulf %52, %53 : vector<32x256xf32>
    %55 = arith.addf %40, %54 : vector<32x256xf32>
    %c240_i32 = arith.constant 240 : i32
    %56 = tpu.dynamic_rotate %51 by %c240_i32 dim 1 : vector<32x256xf32>, i32 -> vector<32x256xf32>
    %57 = vector.broadcast %8 : vector<1x256xf32> to vector<32x256xf32>
    %58 = arith.mulf %56, %57 : vector<32x256xf32>
    %59 = arith.addf %55, %58 : vector<32x256xf32>
    %c0_8 = arith.constant 0 : index
    %c0_9 = arith.constant 0 : index
    %c0_10 = arith.constant 0 : index
    %60 = vector.load %arg6[%c0_8, %c0_9, %c0_10] : memref<1x32x256xf32, #tpu.memory_space<vmem>>, vector<1x32x256xf32>
    %61 = vector.shape_cast %60 : vector<1x32x256xf32> to vector<32x256xf32>
    %62 = vector.shape_cast %59 : vector<32x256xf32> to vector<1x32x256xf32>
    tpu.vector_store %arg6[%c0_8, %c0_9, %c0_10], %62 {strides = array<i32>} : memref<1x32x256xf32, #tpu.memory_space<vmem>>, vector<1x32x256xf32>,
    return
  }
  func.func @transform_0(%arg0: i32, %arg1: i32) -> (i32, i32, i32) {
    %c0_i32 = arith.constant 0 : i32
    %c0_i32_0 = arith.constant 0 : i32
    return %arg1, %arg0, %c0_i32 : i32, i32, i32
  }
  func.func @transform_1(%arg0: i32, %arg1: i32) -> (i32, i32) {
    %c0_i32 = arith.constant 0 : i32
    %c0_i32_0 = arith.constant 0 : i32
    return %arg0, %c0_i32 : i32, i32
  }
  func.func @transform_2(%arg0: i32, %arg1: i32) -> (i32, i32) {
    %c0_i32 = arith.constant 0 : i32
    %c0_i32_0 = arith.constant 0 : i32
    return %arg0, %c0_i32 : i32, i32
  }
  func.func @transform_3(%arg0: i32, %arg1: i32) -> (i32, i32) {
    %c0_i32 = arith.constant 0 : i32
    %c0_i32_0 = arith.constant 0 : i32
    %c0_i32_1 = arith.constant 0 : i32
    return %c0_i32, %c0_i32_0 : i32, i32
  }
  func.func @transform_4(%arg0: i32, %arg1: i32) -> (i32, i32, i32) {
    %c0_i32 = arith.constant 0 : i32
    %c0_i32_0 = arith.constant 0 : i32
    return %arg1, %arg0, %c0_i32 : i32, i32, i32
  }
}

</mosaic_0001>

<bundles_post_ra>
// kernel: tpu_custom_call.1
= control target key start
LH: loop header
LB: loop body
LE: loop exit
PB: predicated region body
PF: predicated region fallthrough
CT: control target
= control target key end

     0   :  { %9 = vsyncpa [#allocation3], 0  ;;  %s1868_s0 = inlined_call_operand.hbm [shape: f32[2,32,256], index: 0, kind: input, shape index: {}]   ;;  %s1869_s1 = inlined_call_operand.vmem [shape: f32[32,9], index: 1, kind: input, shape index: {}]   ;;  %s1870_s2 = inlined_call_operand.vmem [shape: f32[32,1], index: 2, kind: input, shape index: {}]   ;;  %s1871_s3 = inlined_call_operand.vmem [shape: f32[4,256], index: 3, kind: input, shape index: {}]   ;;  %s1872_s4 = inlined_call_operand.hbm [shape: f32[2,32,256], index: 4, kind: output, shape index: {}]  }
   0x1   :  { %11 = vsyncpa [#allocation3 + $0x1], 0 }
   0x2   :  { %12 = vsyncpa [#allocation4], 0 }
   0x3   :  { %14 = vsyncpa [#allocation4 + $0x1], 0  ;;  %s1242_s15 = smov 0   ;;  %s1244_s16 = smov 0  }
   0x4   :  { %s1246_s17 = smov 0   ;;  %s1248_s18 = smov 0  }
   0x5   :  { %s1250_s19 = smov 0   ;;  %s1252_s20 = smov 0  }
   0x6 LB: > { %s967_s21 = sadd.s32 4294967295, %s1197_s20   ;;  %s968_s22 = sadd.s32 4294967294, %s1197_s20   ;;  %s1197_s20 = sphi %s1252_s20, %s20_s20   ;;  %s1193_s19 = sphi %s1250_s19, %s1887_s19   ;;  %s1189_s18 = sphi %s1248_s18, %s1886_s18   ;;  %s1185_s17 = sphi %s1246_s17, %s1885_s17   ;;  %s1181_s16 = sphi %s1244_s16, %s1884_s16   ;;  %s1177_s15 = sphi %s1242_s15, %s1883_s15  }
   0x7   : > { %s29_s23 = sadd.s32 1, %s1193_s19  ;;  %s41_s24 = sadd.s32 1, %s1185_s17 }
   0x8   : > { %p30_p0 = scmp.ge.s32.totalorder %s29_s23, 2  ;;  %p48_p1 = scmp.ne.s32.totalorder %s1185_s17, %s1181_s16 }
   0x9   : > { %p49_p2 = scmp.eq.s32.totalorder %s1197_s20, 0  ;;  %p54_p3 = scmp.ne.s32.totalorder %s1181_s16, %s1177_s15 }
   0xa   : > { %s1889_s23 = smov (%p30_p0, %s29_s23), 0  ;;  %p55_p5 = scmp.eq.s32.totalorder %s967_s21, 0 }
   0xb   : > { %p1283_p4 = por %p49_p2, %p48_p1  ;;  %s36_s26 = ssub.s32 %s1193_s19, %s1889_s23 }
   0xc   : > { %p153_p6 = scmp.eq.s32.totalorder %s967_s21, 1  ;;  %p39_p7 = scmp.eq.s32.totalorder %s36_s26, 0 }
   0xd   : > { %p1289_p8 = por %p55_p5, %p54_p3  ;;  %p159_p10 = scmp.eq.s32.totalorder %s968_s22, 1 }
   0xe   : > { %p1293_p9 = por %p153_p6, %p48_p1  ;;  %p998_p13 = scmp.lt.s32.totalorder %s1197_s20, 2 }
   0xf   : > { %s1298_s29 = scalar_select %p39_p7, %s1185_s17, %s41_s24  }
  0x10   : > { %s1876_s28 = scalar_select %p1293_p9, 1, 0 }
  0x11   : > { %p1300_p11 = por %p159_p10, %p54_p3  ;;  %s200_s5 = sand.u32 1, %s1185_s17  }
  0x12   : > { %s973_s6 = sshll.u32 %s200_s5, 6  ;;  %s984_s7 = sshll.u32 %s1193_s19, 10 }
  0x13   : > { %s1877_s30 = scalar_select %p1300_p11, 1, 0 }
  0x14   : > { %s1311_s10 = scalar_lea.hbm %s1868_s0, %s984_s7  ;;  %s204_s11 = scalar_lea.vmem [#allocation2], %s973_s6 }
  0x15   : > { %s214_s12 = sshll.u32 %s204_s11, 4  ;;  %p1317_p0 = pnand %p998_p13, %p1283_p4  ;;  %s1313_s12 = int_to_ptr.vmem [resolvable:$true] %s214_s12 }
  0x16   : > { %s1322_s14 = scalar_lea.sflag [#allocation3], %s200_s5  ;;  %s1085_s21 = scalar_lea.hbm %s1311_s10, 1024 }
  0x17   : > { %p1086_p2 = scmp.ne.s32.totalorder %s1311_s10, %s1085_s21  ;;  %p1087_p3 = pneg %p1317_p0 }
  0x18   : > { %s1090_s25 = scalar_lea.hbm %s1868_s0, 2048  ;;  %p1091_p4 = scmp.lt.u32.totalorder %s1311_s10, %s1868_s0 }
  0x19   : > { %p1088_p5 = pnand %p1087_p3, %p1086_p2  ;;  %p1092_p7 = scmp.lt.u32.totalorder %s1090_s25, %s1085_s21 }
  0x1a   : > { %p1094_p13 = scmp.lt.u32.totalorder %s1085_s21, %s1311_s10 }
  0x1b   : > { %p1089_p6 = pneg %p1088_p5  ;;  %p1093_p10 = por %p1092_p7, %p1091_p4 }
  0x1d   : > { %p1095_p12 = por %p1094_p13, %p1093_p10 }
  0x1f   : > { %p1096_p1 = pnand %p1095_p12, %p1089_p6 }
  0x21   : > { %1099 = shalt.err (!%p1096_p1)
}
  0x22   : > { %s1100_s5 = scalar_lea.vmem %s1313_s12, 1024  ;;  %s1199_s7 = smov [#allocation2]  }
  0x23   : > { %p1101_p2 = scmp.ne.s32.totalorder %s1313_s12, %s1100_s5  ;;  %s1105_s8 = sshll.u32 %s1199_s7, 4  ;;  %s1106_s8 = int_to_ptr.vmem [resolvable:$false] %s1105_s8 }
  0x24   : > { %s1107_s9 = scalar_lea.vmem %s1106_s8, 2048  ;;  %p1108_p9 = scmp.lt.s32.totalorder %s1313_s12, %s1106_s8 }
  0x25   : > { %p1103_p5 = pnand %p1101_p2, %p1087_p3  ;;  %p1109_p4 = scmp.lt.s32.totalorder %s1107_s9, %s1100_s5 }
  0x27   : > { %p1104_p11 = pneg %p1103_p5  ;;  %p1110_p7 = por %p1109_p4, %p1108_p9 }
  0x29   : > { %p1111_p10 = pnand %p1110_p7, %p1104_p11 }
  0x2b   : > { %1114 = shalt.err (!%p1111_p10)
}
  0x2c   : > { %s1200_s11 = smov 256   ;;  %s1201_s21 = smov 16  }
  0x2d   : > { %993 = dma.hbm_to_vmem [thread:$0]  (!%p1317_p0), %s1311_s10, 1024, %s1313_s12, %s1322_s14, %s1200_s11, %s1200_s11, %s1201_s21  }
  0x2e   : > { %p222_p12 = scmp.lt.s32.totalorder %s1197_s20, 3  ;;  %p1879_p1 = scmp.ge.s32.totalorder %s1197_s20, 1 }
  0x30   : > { %p223_p3 = pnand %p1879_p1, %p222_p12 }
  0x31   : > { %s1354_s22 = sand.u32 (!%p223_p3), 1, %s1181_s16  }
  0x32   : > { %226 = sbr.rel (%p223_p3) target bundleno = 437 (0x1b5), region = 36  ;;  %s977_s24 = sshll.u32 (!%p223_p3), %s1354_s22, 6 }
  0x33   : > { %s229_s25 = scalar_lea.sflag (!%p223_p3), [#allocation3], %s1354_s22  ;;  %s232_s26 = scalar_lea.vmem (!%p223_p3), [#allocation2], %s977_s24 }
  0x39   : > { %1168 = dma.done.wait (%p1289_p8), %s229_s25, 1024  }
  0x3a   : > { %1170 = vsyncadd (%p1289_p8), %s229_s25, 4294966272  ;;  %v1202_v0 = vmov 0   ;;  %v1366_v1 = vld [vmem:[%s232_s26 + $0x20] sm:$0xff]  ;;  %s1203_s10 = smov 1   ;;  %v1372_v3 = vld [vmem:[%s232_s26 + $0x30] sm:$0xff]  ;;  %s1204_s27 = smov 127   ;;  %v314_v43 = vlaneseq }
  0x3b   : > { %1065 = vset.pattern.permute.xlu1 %v1202_v0  ;;  %1064 = vset.pattern.permute.xlu0 %v1202_v0  ;;  %v1368_v2 = vld [vmem:[%s232_s26] sm:$0xff]  ;;  %v1374_v4 = vld [vmem:[%s232_s26 + $0x10] sm:$0xff]  ;;  %v1378_v5 = vld [vmem:[%s232_s26 + $0x18] sm:$0xff]  ;;  %v1205_v13 = vmov 1   ;;  %v1206_v14 = vmov 2   ;;  %v1207_v15 = vmov 6  }
  0x3c   : > { %302 = vrot.lane.b32.xlu1 %v1366_v1, %s1203_s10  ;;  %298 = vrot.lane.b32.xlu0 %v1368_v2, %s1203_s10  ;;  %v1380_v6 = vld [vmem:[%s232_s26 + $0x8] sm:$0xff]  ;;  %v1384_v7 = vld [vmem:[%s232_s26 + $0x38] sm:$0xff]  ;;  %v1208_v16 = vmov 7   ;;  %v1209_v17 = vmov 3   ;;  %v1210_v18 = vmov 8   ;;  %v1211_v20 = vmov 4  }
  0x3d   : > { %v1386_v8 = vld [vmem:[%s232_s26 + $0x28] sm:$0xff]  ;;  %v1406_v10 = vld [vmem:[%s1869_s1] sm:$0xff]  ;;  %v1413_v11 = vld [vmem:[%s1869_s1 + $0x10] sm:$0xff]  ;;  %v1212_v21 = vmov 5   ;;  %v1492_v46 = vshrl.u32 %v314_v43, 7  ;;  %v1504_v51 = vand.u32 127, %v314_v43 }
  0x3e   : > { %v1401_v9 = vld [vmem:[%s1869_s1 + $0x8] sm:$0xff]  ;;  %v1418_v12 = vld [vmem:[%s1869_s1 + $0x18] sm:$0xff]  ;;  %v521_v19 = vadd.f32 1.0, %v1413_v11  ;;  %v293_v22 = vld [vmem:[%s1870_s2] sm:$0xff]  ;;  %v519_v24 = vadd.f32 1.0, %v1406_v10  ;;  %s1213_s5 = smov 16  }
  0x3f   : > { %v296_v23 = vld [vmem:[%s1870_s2 + $0x18] sm:$0xff]  ;;  %v520_v25 = vadd.f32 1.0, %v1401_v9  ;;  %v522_v26 = vadd.f32 1.0, %v1418_v12  ;;  %v294_v33 = vld [vmem:[%s1870_s2 + $0x8] sm:$0xff]  ;;  %v295_v36 = vld [vmem:[%s1870_s2 + $0x10] sm:$0xff]  ;;  %v328_v49 = vsub.s32 0, %v1492_v46 }
  0x40   : > { %304 = vrot.lane.b32.xlu1 %v1372_v3, %s1203_s10  ;;  %300 = vrot.lane.b32.xlu0 %v1374_v4, %s1203_s10  ;;  %v1502_v50 = vld [vmem:[%s1871_s3] sm:$0xff]  ;;  %v379_v52 = vsub.s32 1, %v1492_v46  ;;  %vm316_vm0 = vcmp.lt.s32.totalorder %v1504_v51, 1  ;;  %v332_v57 = vsub.s32 4, %v1492_v46  ;;  %vm368_vm1 = vcmp.lt.s32.totalorder %v1504_v51, 127  ;;  %s1214_s7 = smov 112  }
  0x41   : > { %v329_v55 = vrot.slane %v1502_v50, %v328_v49  ;;  %vm723_vm2 = vcmp.lt.s32.totalorder %v1504_v51, 16  ;;  %vm782_vm3 = vcmp.lt.s32.totalorder %v1504_v51, 112  ;;  %s1789_s8 = scalar_lea.vmem [#allocation5], %s977_s24  ;;  %s985_s24 = sshll.u32 %s1189_s18, 10 }
  0x42   : > { %v380_v56 = vrot.slane %v1502_v50, %v379_v52  ;;  %s850_s9 = sshll.u32 %s1789_s8, 4  ;;  %s1814_s21 = scalar_lea.hbm %s1872_s4, %s985_s24  ;;  %s1816_s9 = int_to_ptr.vmem [resolvable:$true] %s850_s9 }
  0x43   : > { %v339_v59 = vrot.slane %v329_v55, %v328_v49  ;;  %s834_s25 = scalar_lea.sflag [#allocation4], %s1354_s22  ;;  %s1115_s26 = scalar_lea.vmem %s1816_s9, 1024 }
  0x44   : > { %308 = vrot.lane.b32.xlu1 %v1378_v5, %s1203_s10  ;;  %306 = vrot.lane.b32.xlu0 %v1380_v6, %s1203_s10  ;;  %p1116_p8 = scmp.ne.s32.totalorder %s1816_s9, %s1115_s26  ;;  %p1880_p9 = scmp.ne.s32.totalorder %s1876_s28, 0 }
  0x46   : > { %p1117_p11 = pnand %p1116_p8, %p1880_p9 }
  0x48   : > { %312 = vrot.lane.b32.xlu1 %v1384_v7, %s1203_s10  ;;  %310 = vrot.lane.b32.xlu0 %v1386_v8, %s1203_s10  ;;  %p1118_p0 = pneg %p1117_p11  ;;  %s1215_s10 = smov [#allocation5]  }
  0x4c   : > { %354 = vrot.lane.b32.xlu1 %v1374_v4, %s1204_s27  ;;  %352 = vrot.lane.b32.xlu0 %v1368_v2, %s1204_s27 }
  0x50   : > { %358 = vrot.lane.b32.xlu1 %v1372_v3, %s1204_s27  ;;  %356 = vrot.lane.b32.xlu0 %v1366_v1, %s1204_s27 }
  0x54   : > { %362 = vrot.lane.b32.xlu1 %v1378_v5, %s1204_s27  ;;  %360 = vrot.lane.b32.xlu0 %v1380_v6, %s1204_s27 }
  0x58   : > { %366 = vrot.lane.b32.xlu1 %v1384_v7, %s1204_s27  ;;  %364 = vrot.lane.b32.xlu0 %v1386_v8, %s1204_s27  ;;  %s1119_s27 = sshll.u32 %s1215_s10, 4  ;;  %s1120_s27 = int_to_ptr.vmem [resolvable:$false] %s1119_s27 }
  0x59   : > { %s1121_s12 = scalar_lea.vmem %s1120_s27, 2048  ;;  %p1122_p6 = scmp.lt.s32.totalorder %s1816_s9, %s1120_s27 }
  0x5a   : > { %p1123_p13 = scmp.lt.s32.totalorder %s1121_s12, %s1115_s26 }
  0x5c   : > { %410 = vperm.xlu1 %1065, %v1401_v9   ;;  %405 = vperm.xlu0 %1064, %v1406_v10   ;;  %p1124_p2 = por %p1123_p13, %p1122_p6 }
  0x5e   : > { %p1125_p5 = pnand %p1124_p2, %p1118_p0 }
  0x60   : > { %415 = vperm.xlu1 %1065, %v1413_v11   ;;  %420 = vperm.xlu0 %1064, %v1418_v12  }
  0x64   : > { %1066 = vset.pattern.permute.xlu1 %v1205_v13  ;;  %1067 = vset.pattern.permute.xlu0 %v1205_v13 }
  0x65   : > { %432 = vperm.xlu1 %1066, %v1406_v10   ;;  %436 = vperm.xlu0 %1067, %v1401_v9  }
  0x69   : > { %440 = vperm.xlu1 %1066, %v1413_v11   ;;  %1068 = vset.pattern.permute.xlu0 %v1206_v14 }
  0x6a   : > { %464 = vperm.xlu0 %1068, %v1406_v10  }
  0x6d   : > { %444 = vperm.xlu1 %1066, %v1418_v12  }
  0x6e   : > { %476 = vperm.xlu0 %1068, %v1418_v12  }
  0x71   : > { %1069 = vset.pattern.permute.xlu1 %v1206_v14 }
  0x72   : > { %468 = vperm.xlu1 %1069, %v1401_v9   ;;  %1072 = vset.pattern.permute.xlu0 %v1207_v15 }
  0x73   : > { %624 = vperm.xlu0 %1072, %v1401_v9  }
  0x76   : > { %472 = vperm.xlu1 %1069, %v1413_v11  }
  0x77   : > { %1073 = vset.pattern.permute.xlu0 %v1208_v16 }
  0x78   : > { %644 = vperm.xlu0 %1073, %v1406_v10  }
  0x7a   : > { %1070 = vset.pattern.permute.xlu1 %v1209_v17 }
  0x7b   : > { %496 = vperm.xlu1 %1070, %v1406_v10  }
  0x7c   : > { %656 = vperm.xlu0 %1073, %v1418_v12  }
  0x7f   : > { %504 = vperm.xlu1 %1070, %v1413_v11  }
  0x80   : > { %1076 = vset.pattern.permute.xlu0 %v1210_v18 }
  0x81   : > { %680 = vperm.xlu0 %1076, %v1401_v9  }
  0x83   : > { %1071 = vset.pattern.permute.xlu1 %v1207_v15 }
  0x84   : > { %620 = vperm.xlu1 %1071, %v1406_v10  }
  0x85   : > { %1077 = vset.pattern.permute.xlu0 %v1209_v17 }
  0x86   : > { %500 = vperm.xlu0 %1077, %v1401_v9  }
  0x88   : > { %628 = vperm.xlu1 %1071, %v1413_v11  }
  0x8a   : > { %508 = vperm.xlu0 %1077, %v1418_v12  }
  0x8c   : > { %632 = vperm.xlu1 %1071, %v1418_v12  }
  0x8e   : > { %1079 = vset.pattern.permute.xlu0 %v1211_v20 }
  0x8f   : > { %535 = vperm.xlu0 %1079, %v521_v19  }
  0x90   : > { %1074 = vset.pattern.permute.xlu1 %v1208_v16 }
  0x91   : > { %648 = vperm.xlu1 %1074, %v1401_v9  }
  0x93   : > { %1081 = vset.pattern.permute.xlu0 %v1212_v21 }
  0x94   : > { %564 = vperm.xlu0 %1081, %v1401_v9  }
  0x95   : > { %652 = vperm.xlu1 %1074, %v1413_v11  }
  0x98   : > { %1082 = vset.pattern.permute.xlu0 %v1202_v0 }
  0x99   : > { %1075 = vset.pattern.permute.xlu1 %v1210_v18  ;;  %593 = vperm.xlu0 %1082, %v293_v22  }
  0x9a   : > { %676 = vperm.xlu1 %1075, %v1406_v10  }
  0x9d   : > { %608 = vperm.xlu0 %1082, %v296_v23  }
  0x9e   : > { %684 = vperm.xlu1 %1075, %v1413_v11  }
  0xa1   : > { %1084 = vset.pattern.permute.xlu0 %v1210_v18 }
  0xa2   : > { %688 = vperm.xlu1 %1075, %v1418_v12  }
  0xa6   : > { %1078 = vset.pattern.permute.xlu1 %v1211_v20 }
  0xa7   : > { %525 = vperm.xlu1 %1078, %v519_v24  }
  0xab   : > { %530 = vperm.xlu1 %1078, %v520_v25  }
  0xae   : > { %v1458_v27 = vpop.permute.xlu1 %302  ;;  %v1460_v28 = vpop.permute.xlu0 %298 }
  0xaf   : > { %540 = vperm.xlu1 %1078, %v522_v26  }
  0xb2   : > { %v1462_v29 = vpop.permute.xlu1 %304  ;;  %v301_v30 = vpop.permute.xlu0 %300 }
  0xb3   : > { %1080 = vset.pattern.permute.xlu1 %v1212_v21 }
  0xb4   : > { %560 = vperm.xlu1 %1080, %v1406_v10   ;;  %v333_v10 = vrot.slane %v1502_v50, %v332_v57 }
  0xb6   : > { %v309_v31 = vpop.permute.xlu1 %308  ;;  %v1466_v32 = vpop.permute.xlu0 %306  ;;  %v343_v18 = vrot.slane %v333_v10, %v328_v49 }
  0xb7   : > { %v321_v58 = vsel %vm316_vm0, %v1466_v32, %v1460_v28  ;;  %v322_v19 = vsel %vm316_vm0, %v309_v31, %v301_v30  ;;  %v318_v21 = vsel %vm316_vm0, %v301_v30, %v309_v31  ;;  %v317_v43 = vsel %vm316_vm0, %v1460_v28, %v1466_v32 }
  0xb8   : > { %568 = vperm.xlu1 %1080, %v1413_v11   ;;  %v1523_v63 = vmul.f32 %v339_v59, %v321_v58  ;;  %v383_v11 = vsub.s32 5, %v1492_v46  ;;  %v1547_v26 = vmul.f32 %v339_v59, %v322_v19  ;;  %v1591_v19 = vmul.f32 %v343_v18, %v317_v43 }
  0xba   : > { %v1472_v34 = vpop.permute.xlu1 %312  ;;  %v1474_v35 = vpop.permute.xlu0 %310  ;;  %v384_v20 = vrot.slane %v1502_v50, %v383_v11 }
  0xbb   : > { %v324_v22 = vsel %vm316_vm0, %v1472_v34, %v1462_v29 }
  0xbc   : > { %572 = vperm.xlu1 %1080, %v1418_v12   ;;  %v1565_v49 = vmul.f32 %v339_v59, %v324_v22  ;;  %v394_v55 = vrot.slane %v384_v20, %v379_v52 }
  0xbe   : > { %v1480_v37 = vpop.permute.xlu0 %352  ;;  %v1482_v38 = vpop.permute.xlu1 %354 }
  0xc0   : > { %1083 = vset.pattern.permute.xlu1 %v1202_v0  ;;  %v390_v0 = vrot.slane %v380_v56, %v379_v52 }
  0xc1   : > { %598 = vperm.xlu1 %1083, %v294_v33   ;;  %v323_v33 = vsel %vm316_vm0, %v1474_v35, %v1458_v27 }
  0xc2   : > { %v1484_v39 = vpop.permute.xlu0 %356  ;;  %v1486_v40 = vpop.permute.xlu1 %358 }
  0xc5   : > { %603 = vperm.xlu1 %1083, %v295_v36   ;;  %v1559_v36 = vmul.f32 %v343_v18, %v318_v21 }
  0xc6   : > { %v361_v41 = vpop.permute.xlu0 %360  ;;  %v363_v42 = vpop.permute.xlu1 %362 }
  0xc7   : > { %v369_v62 = vsel %vm368_vm1, %v1480_v37, %v361_v41  ;;  %v370_v25 = vsel %vm368_vm1, %v1482_v38, %v363_v42  ;;  %v374_v28 = vsel %vm368_vm1, %v363_v42, %v1482_v38  ;;  %v373_v52 = vsel %vm368_vm1, %v361_v41, %v1480_v37 }
  0xc8   : > { %v1528_v12 = vmul.f32 %v390_v0, %v369_v62  ;;  %v1567_v56 = vmul.f32 %v390_v0, %v370_v25  ;;  %v320_v38 = vsel %vm316_vm0, %v1462_v29, %v1472_v34  ;;  %v319_v37 = vsel %vm316_vm0, %v1458_v27, %v1474_v35 }
  0xc9   : > { %v1612_v34 = vmul.f32 %v394_v55, %v373_v52 }
  0xca   : > { %v1488_v44 = vpop.permute.xlu0 %364  ;;  %v1490_v45 = vpop.permute.xlu1 %366 }
  0xcb   : > { %v372_v30 = vsel %vm368_vm1, %v1486_v40, %v1490_v45  ;;  %v371_v57 = vsel %vm368_vm1, %v1484_v39, %v1488_v44  ;;  %v376_v29 = vsel %vm368_vm1, %v1490_v45, %v1486_v40 }
  0xcc   : > { %v1581_v32 = vmul.f32 %v390_v0, %v372_v30  ;;  %v1601_v41 = vmul.f32 %v390_v0, %v371_v57  ;;  %v375_v0 = vsel %vm368_vm1, %v1488_v44, %v1484_v39  ;;  %v1631_v57 = vmul.f32 %v343_v18, %v319_v37 }
  0xdb   : > { %v1494_v47 = vpop.permute.xlu1 %410  ;;  %v1496_v48 = vpop.permute.xlu0 %405 }
  0xdc   : > { %v423_v13 = vmul.f32 %v1496_v48, %v1523_v63  ;;  %v425_v58 = vmul.f32 %v1494_v47, %v1547_v26  ;;  %v426_v40 = vmul.f32 %v1494_v47, %v1559_v36  ;;  %v424_v45 = vmul.f32 %v1496_v48, %v1591_v19 }
  0xdf   : > { %v1507_v53 = vpop.permute.xlu1 %415  ;;  %v1509_v54 = vpop.permute.xlu0 %420 }
  0xe4   : > { %v433_v60 = vpop.permute.xlu1 %432  ;;  %v437_v61 = vpop.permute.xlu0 %436 }
  0xe5   : > { %v447_v9 = vmul.f32 %v433_v60, %v1368_v2  ;;  %v449_v31 = vmul.f32 %v437_v61, %v1374_v4  ;;  %v448_v27 = vmul.f32 %v433_v60, %v1380_v6  ;;  %v450_v25 = vmul.f32 %v437_v61, %v1378_v5 }
  0xe7   : > { %v455_v16 = vadd.f32 %v447_v9, %v423_v13  ;;  %v1576_v9 = vmul.f32 %v339_v59, %v323_v33  ;;  %v429_v13 = vmul.f32 %v1509_v54, %v1565_v49  ;;  %v458_v52 = vadd.f32 %v450_v25, %v426_v40 }
  0xe8   : > { %v1532_v14 = vpop.permute.xlu1 %440 }
  0xe9   : > { %v465_v15 = vpop.permute.xlu0 %464  ;;  %v451_v59 = vmul.f32 %v1532_v14, %v1366_v1  ;;  %v427_v42 = vmul.f32 %v1507_v53, %v1576_v9  ;;  %v452_v48 = vmul.f32 %v1532_v14, %v1386_v8 }
  0xea   : > { %v479_v17 = vmul.f32 %v465_v15, %v1528_v12  ;;  %v480_v60 = vmul.f32 %v465_v15, %v1612_v34 }
  0xeb   : > { %v459_v33 = vadd.f32 %v451_v59, %v427_v42 }
  0xec   : > { %v487_v23 = vadd.f32 %v479_v17, %v455_v16  ;;  %v445_v24 = vpop.permute.xlu1 %444  ;;  %v457_v16 = vadd.f32 %v449_v31, %v425_v58  ;;  %v1622_v31 = vmul.f32 %v343_v18, %v320_v38  ;;  %v1633_v58 = vmul.f32 %v394_v55, %v376_v29 }
  0xed   : > { %v453_v62 = vmul.f32 %v445_v24, %v1372_v3  ;;  %v477_v10 = vpop.permute.xlu0 %476  ;;  %v454_v43 = vmul.f32 %v445_v24, %v1384_v7  ;;  %v428_v18 = vmul.f32 %v1507_v53, %v1631_v57 }
  0xee   : > { %707 = vrot.lane.b32.xlu1 %v487_v23, %s1213_s5  ;;  %v485_v21 = vmul.f32 %v477_v10, %v1581_v32  ;;  %v1606_v23 = vmul.f32 %v394_v55, %v374_v28  ;;  %v456_v28 = vadd.f32 %v448_v27, %v424_v45  ;;  %v430_v47 = vmul.f32 %v1509_v54, %v1622_v31 }
  0xef   : > { %v461_v20 = vadd.f32 %v453_v62, %v429_v13  ;;  %v1635_v62 = vmul.f32 %v394_v55, %v375_v0  ;;  %v486_v13 = vmul.f32 %v477_v10, %v1633_v58  ;;  %v460_v59 = vadd.f32 %v452_v48, %v428_v18 }
  0xf0   : > { %v488_v24 = vadd.f32 %v480_v60, %v456_v28  ;;  %v462_v54 = vadd.f32 %v454_v43, %v430_v47 }
  0xf1   : > { %v469_v11 = vpop.permute.xlu1 %468  ;;  %v493_v39 = vadd.f32 %v485_v21, %v461_v20 }
  0xf2   : > { %v481_v17 = vmul.f32 %v469_v11, %v1567_v56  ;;  %v482_v44 = vmul.f32 %v469_v11, %v1606_v23  ;;  %v494_v37 = vadd.f32 %v486_v13, %v462_v54  ;;  %v625_v42 = vpop.permute.xlu0 %624 }
  0xf3   : > { %v637_v25 = vmul.f32 %v625_v42, %v1547_v26 }
  0xf4   : > { %v489_v22 = vadd.f32 %v481_v17, %v457_v16  ;;  %v490_v16 = vadd.f32 %v482_v44, %v458_v52 }
  0xf5   : > { %v473_v35 = vpop.permute.xlu1 %472 }
  0xf6   : > { %v483_v30 = vmul.f32 %v473_v35, %v1601_v41  ;;  %709 = vrot.lane.b32.xlu0 %v489_v22, %s1213_s5  ;;  %v484_v14 = vmul.f32 %v473_v35, %v1635_v62 }
  0xf7   : > { %v645_v21 = vpop.permute.xlu0 %644 }
  0xf8   : > { %v491_v61 = vadd.f32 %v483_v30, %v459_v33  ;;  %v492_v20 = vadd.f32 %v484_v14, %v460_v59  ;;  %v659_v43 = vmul.f32 %v645_v21, %v1368_v2  ;;  %v660_v18 = vmul.f32 %v645_v21, %v1380_v6 }
  0xfa   : > { %v497_v15 = vpop.permute.xlu1 %496  ;;  %713 = vrot.lane.b32.xlu0 %v493_v39, %s1213_s5  ;;  %711 = vrot.lane.b32.xlu1 %v491_v61, %s1213_s5 }
  0xfb   : > { %v1646_v55 = vmul.f32 %v497_v15, %v1523_v63  ;;  %v1649_v11 = vmul.f32 %v497_v15, %v1591_v19  ;;  %v657_v29 = vpop.permute.xlu0 %656 }
  0xfe   : > { %v505_v17 = vpop.permute.xlu1 %504  ;;  %717 = vrot.lane.b32.xlu0 %v490_v16, %s1213_s5  ;;  %715 = vrot.lane.b32.xlu1 %v488_v24, %s1213_s5  ;;  %v665_v24 = vmul.f32 %v657_v29, %v1372_v3 }
  0xff   : > { %v1656_v53 = vmul.f32 %v505_v17, %v1576_v9  ;;  %v1659_v38 = vmul.f32 %v505_v17, %v1631_v57 }
 0x100   : > { %v681_v35 = vpop.permute.xlu0 %680 }
 0x101   : > { %v693_v30 = vmul.f32 %v681_v35, %v1567_v56 }
 0x102   : > { %721 = vrot.lane.b32.xlu0 %v494_v37, %s1213_s5  ;;  %719 = vrot.lane.b32.xlu1 %v492_v20, %s1213_s5  ;;  %v638_v20 = vmul.f32 %v625_v42, %v1559_v36  ;;  %v694_v42 = vmul.f32 %v681_v35, %v1606_v23 }
 0x103   : > { %v621_v10 = vpop.permute.xlu1 %620 }
 0x104   : > { %v635_v39 = vmul.f32 %v621_v10, %v1523_v63  ;;  %v636_v63 = vmul.f32 %v621_v10, %v1591_v19 }
 0x105   : > { %v501_v44 = vpop.permute.xlu0 %500 }
 0x106   : > { %v667_v28 = vadd.f32 %v659_v43, %v635_v39 }
 0x107   : > { %v629_v22 = vpop.permute.xlu1 %628 }
 0x108   : > { %v639_v48 = vmul.f32 %v629_v22, %v1576_v9 }
 0x109   : > { %v1675_v13 = vpop.permute.xlu0 %508 }
 0x10b   : > { %v633_v27 = vpop.permute.xlu1 %632 }
 0x10c   : > { %v641_v16 = vmul.f32 %v633_v27, %v1565_v49 }
 0x110   : > { %v649_v0 = vpop.permute.xlu1 %648 }
 0x111   : > { %v661_v33 = vmul.f32 %v649_v0, %v1374_v4  ;;  %v662_v17 = vmul.f32 %v649_v0, %v1378_v5 }
 0x113   : > { %v669_v40 = vadd.f32 %v661_v33, %v637_v25  ;;  %v668_v25 = vadd.f32 %v660_v18, %v636_v63  ;;  %v673_v33 = vadd.f32 %v665_v24, %v641_v16 }
 0x114   : > { %v653_v45 = vpop.permute.xlu1 %652 }
 0x115   : > { %v701_v60 = vadd.f32 %v693_v30, %v669_v40  ;;  %v663_v47 = vmul.f32 %v653_v45, %v1366_v1  ;;  %v664_v19 = vmul.f32 %v653_v45, %v1386_v8  ;;  %v640_v30 = vmul.f32 %v629_v22, %v1631_v57  ;;  %v536_v40 = vpop.permute.xlu0 %535 }
 0x117   : > { %768 = vrot.lane.b32.xlu0 %v701_v60, %s1214_s7  ;;  %v671_v14 = vadd.f32 %v663_v47, %v639_v48  ;;  %v670_v60 = vadd.f32 %v662_v17, %v638_v20  ;;  %v672_v47 = vadd.f32 %v664_v19, %v640_v30  ;;  %v734_v19 = vsub.s32 2, %v1492_v46 }
 0x118   : > { %v738_v30 = vsub.s32 6, %v1492_v46 }
 0x119   : > { %v677_v61 = vpop.permute.xlu1 %676  ;;  %v702_v22 = vadd.f32 %v694_v42, %v670_v60  ;;  %v735_v60 = vrot.slane %v1502_v50, %v734_v19  ;;  %v797_v42 = vsub.s32 7, %v1492_v46 }
 0x11a   : > { %v691_v52 = vmul.f32 %v677_v61, %v1528_v12  ;;  %v692_v9 = vmul.f32 %v677_v61, %v1612_v34  ;;  %v666_v61 = vmul.f32 %v657_v29, %v1384_v7  ;;  %v513_v29 = vmul.f32 %v501_v44, %v1547_v26 }
 0x11c   : > { %v699_v15 = vadd.f32 %v691_v52, %v667_v28  ;;  %v700_v43 = vadd.f32 %v692_v9, %v668_v25  ;;  %v642_v28 = vmul.f32 %v633_v27, %v1622_v31  ;;  %v514_v27 = vmul.f32 %v501_v44, %v1559_v36 }
 0x11d   : > { %v685_v54 = vpop.permute.xlu1 %684 }
 0x11e   : > { %v695_v59 = vmul.f32 %v685_v54, %v1601_v41  ;;  %766 = vrot.lane.b32.xlu1 %v699_v15, %s1214_s7  ;;  %v696_v0 = vmul.f32 %v685_v54, %v1635_v62  ;;  %v674_v48 = vadd.f32 %v666_v61, %v642_v28  ;;  %v565_v15 = vpop.permute.xlu0 %564  ;;  %v793_v61 = vsub.s32 3, %v1492_v46 }
 0x11f   : > { %v577_v63 = vmul.f32 %v565_v15, %v1567_v56  ;;  %v578_v16 = vmul.f32 %v565_v15, %v1606_v23  ;;  %v739_v28 = vrot.slane %v1502_v50, %v738_v30  ;;  %v798_v15 = vrot.slane %v1502_v50, %v797_v42 }
 0x120   : > { %v703_v37 = vadd.f32 %v695_v59, %v671_v14  ;;  %v704_v52 = vadd.f32 %v696_v0, %v672_v47  ;;  %v547_v47 = vmul.f32 %v536_v40, %v1366_v1  ;;  %v794_v46 = vrot.slane %v1502_v50, %v793_v61 }
 0x121   : > { %v689_v21 = vpop.permute.xlu1 %688  ;;  %v517_v1 = vmul.f32 %v1675_v13, %v1565_v49 }
 0x122   : > { %v697_v10 = vmul.f32 %v689_v21, %v1581_v32  ;;  %770 = vrot.lane.b32.xlu1 %v703_v37, %s1214_s7  ;;  %v698_v57 = vmul.f32 %v689_v21, %v1633_v58 }
 0x124   : > { %v705_v39 = vadd.f32 %v697_v10, %v673_v33  ;;  %v706_v54 = vadd.f32 %v698_v57, %v674_v48  ;;  %v548_v48 = vmul.f32 %v536_v40, %v1386_v8  ;;  %v518_v8 = vmul.f32 %v1675_v13, %v1622_v31 }
 0x125   : > { %v555_v40 = vadd.f32 %v547_v47, %v1656_v53  ;;  %v1747_v31 = vrot.slane %v798_v15, %v793_v61 }
 0x126   : > { %v526_v45 = vpop.permute.xlu1 %525  ;;  %772 = vrot.lane.b32.xlu0 %v705_v39, %s1214_s7  ;;  %774 = vrot.lane.b32.xlu1 %v700_v43, %s1214_s7 }
 0x127   : > { %v543_v43 = vmul.f32 %v526_v45, %v1368_v2  ;;  %v544_v0 = vmul.f32 %v526_v45, %v1380_v6  ;;  %v745_v2 = vrot.slane %v735_v60, %v734_v19 }
 0x129   : > { %v551_v6 = vadd.f32 %v543_v43, %v1646_v55  ;;  %v552_v45 = vadd.f32 %v544_v0, %v1649_v11 }
 0x12a   : > { %v531_v18 = vpop.permute.xlu1 %530  ;;  %776 = vrot.lane.b32.xlu0 %v702_v22, %s1214_s7  ;;  %778 = vrot.lane.b32.xlu1 %v704_v52, %s1214_s7 }
 0x12b   : > { %v545_v35 = vmul.f32 %v531_v18, %v1374_v4  ;;  %v546_v24 = vmul.f32 %v531_v18, %v1378_v5  ;;  %v594_v5 = vpop.permute.xlu0 %593  ;;  %v749_v18 = vrot.slane %v739_v28, %v734_v19 }
 0x12d   : > { %v553_v14 = vadd.f32 %v545_v35, %v513_v29  ;;  %v554_v59 = vadd.f32 %v546_v24, %v514_v27  ;;  %v556_v35 = vadd.f32 %v548_v48, %v1659_v38  ;;  %v1745_v24 = vrot.slane %v794_v46, %v793_v61 }
 0x12e   : > { %780 = vrot.lane.b32.xlu0 %v706_v54, %s1214_s7  ;;  %v541_v26 = vpop.permute.xlu1 %540 }
 0x12f   : > { %v1703_v17 = vadd.f32 %v577_v63, %v553_v14  ;;  %v1705_v9 = vadd.f32 %v578_v16, %v554_v59  ;;  %v1711_v56 = vpop.permute.xlu0 %608 }
 0x133   : > { %v561_v37 = vpop.permute.xlu1 %560 }
 0x134   : > { %v575_v52 = vmul.f32 %v561_v37, %v1528_v12  ;;  %v576_v57 = vmul.f32 %v561_v37, %v1612_v34  ;;  %v549_v12 = vmul.f32 %v541_v26, %v1372_v3  ;;  %v550_v34 = vmul.f32 %v541_v26, %v1384_v7 }
 0x136   : > { %v584_v55 = vadd.f32 %v576_v57, %v552_v45  ;;  %v583_v29 = vadd.f32 %v575_v52, %v551_v6  ;;  %v557_v53 = vadd.f32 %v549_v12, %v517_v1  ;;  %v558_v13 = vadd.f32 %v550_v34, %v518_v8 }
 0x137   : > { %v569_v36 = vpop.permute.xlu1 %568 }
 0x138   : > { %v579_v50 = vmul.f32 %v569_v36, %v1601_v41  ;;  %v580_v49 = vmul.f32 %v569_v36, %v1635_v62  ;;  %v611_v38 = vadd.f32 %v594_v5, %v583_v29  ;;  %v612_v62 = vadd.f32 %v594_v5, %v584_v55 }
 0x13a   : > { %v587_v14 = vadd.f32 %v579_v50, %v555_v40  ;;  %v588_v59 = vadd.f32 %v580_v49, %v556_v35 }
 0x13b   : > { %v573_v44 = vpop.permute.xlu1 %572 }
 0x13c   : > { %v581_v3 = vmul.f32 %v573_v44, %v1581_v32  ;;  %v582_v7 = vmul.f32 %v573_v44, %v1633_v58 }
 0x13e   : > { %v589_v36 = vadd.f32 %v581_v3, %v557_v53  ;;  %v590_v44 = vadd.f32 %v582_v7, %v558_v13 }
 0x140   : > { %v1707_v4 = vpop.permute.xlu1 %598  ;;  %v618_v35 = vadd.f32 %v1711_v56, %v590_v44 }
 0x141   : > { %v613_v19 = vadd.f32 %v1707_v4, %v1703_v17 }
 0x144   : > { %v1709_v20 = vpop.permute.xlu1 %603 }
 0x145   : > { %v615_v42 = vadd.f32 %v1709_v20, %v587_v14  ;;  %v616_v17 = vadd.f32 %v1709_v20, %v588_v59 }
 0x160   : > { %v708_v23 = vpop.permute.xlu1 %707 }
 0x168   : > { %v710_v21 = vpop.permute.xlu0 %709 }
 0x16c   : > { %v712_v25 = vpop.permute.xlu1 %711  ;;  %v1713_v33 = vpop.permute.xlu0 %713 }
 0x170   : > { %v716_v10 = vpop.permute.xlu1 %715  ;;  %v718_v39 = vpop.permute.xlu0 %717 }
 0x171   : > { %v724_v54 = vsel %vm723_vm2, %v708_v23, %v716_v10  ;;  %v728_v41 = vsel %vm723_vm2, %v716_v10, %v708_v23  ;;  %v725_v63 = vsel %vm723_vm2, %v710_v21, %v718_v39  ;;  %v729_v32 = vsel %vm723_vm2, %v718_v39, %v710_v21 }
 0x172   : > { %v750_v23 = vmul.f32 %v745_v2, %v728_v41  ;;  %v751_v5 = vmul.f32 %v749_v18, %v724_v54  ;;  %v614_v21 = vadd.f32 %v1707_v4, %v1705_v9  ;;  %v752_v10 = vmul.f32 %v745_v2, %v729_v32 }
 0x173   : > { %v753_v30 = vmul.f32 %v749_v18, %v725_v63 }
 0x174   : > { %v720_v22 = vpop.permute.xlu1 %719  ;;  %v722_v11 = vpop.permute.xlu0 %721  ;;  %v758_v28 = vadd.f32 %v750_v23, %v611_v38  ;;  %v759_v47 = vadd.f32 %v751_v5, %v612_v62  ;;  %v760_v57 = vadd.f32 %v752_v10, %v613_v19 }
 0x175   : > { %v726_v26 = vsel %vm723_vm2, %v712_v25, %v720_v22  ;;  %v730_v37 = vsel %vm723_vm2, %v720_v22, %v712_v25  ;;  %v727_v60 = vsel %vm723_vm2, %v1713_v33, %v722_v11  ;;  %v731_v25 = vsel %vm723_vm2, %v722_v11, %v1713_v33 }
 0x176   : > { %v754_v43 = vmul.f32 %v745_v2, %v730_v37  ;;  %v755_v0 = vmul.f32 %v749_v18, %v726_v26  ;;  %v761_v22 = vadd.f32 %v753_v30, %v614_v21  ;;  %v756_v48 = vmul.f32 %v745_v2, %v731_v25 }
 0x177   : > { %v757_v6 = vmul.f32 %v749_v18, %v727_v60 }
 0x178   : > { %v762_v45 = vadd.f32 %v754_v43, %v615_v42  ;;  %v763_v46 = vadd.f32 %v755_v0, %v616_v17 }
 0x179   : > { %v765_v38 = vadd.f32 %v757_v6, %v618_v35 }
 0x189   : > { %v769_v58 = vpop.permute.xlu0 %768 }
 0x190   : > { %v767_v27 = vpop.permute.xlu1 %766 }
 0x194   : > { %v771_v16 = vpop.permute.xlu1 %770 }
 0x198   : > { %v773_v39 = vpop.permute.xlu0 %772  ;;  %v775_v61 = vpop.permute.xlu1 %774 }
 0x199   : > { %v783_v9 = vsel %vm782_vm3, %v767_v27, %v775_v61  ;;  %v787_v4 = vsel %vm782_vm3, %v775_v61, %v767_v27  ;;  %v617_v27 = vadd.f32 %v1711_v56, %v589_v36 }
 0x19a   : > { %v809_v52 = vmul.f32 %v1745_v24, %v783_v9  ;;  %v810_v33 = vmul.f32 %v1747_v31, %v787_v4 }
 0x19b   : > { %v764_v41 = vadd.f32 %v756_v48, %v617_v27 }
 0x19c   : > { %v817_v20 = vadd.f32 %v809_v52, %v758_v28  ;;  %v818_v15 = vadd.f32 %v810_v33, %v759_v47  ;;  %v777_v1 = vpop.permute.xlu0 %776  ;;  %v779_v12 = vpop.permute.xlu1 %778 }
 0x19d   : > { %v784_v34 = vsel %vm782_vm3, %v769_v58, %v777_v1  ;;  %v788_v8 = vsel %vm782_vm3, %v777_v1, %v769_v58  ;;  %v785_v40 = vsel %vm782_vm3, %v771_v16, %v779_v12  ;;  %v789_v2 = vsel %vm782_vm3, %v779_v12, %v771_v16 }
 0x19e   : > { %825 = vst [vmem:[%s1789_s8] sm:$0xff] %v817_v20  ;;  %826 = vst [vmem:[%s1789_s8 + $0x8] sm:$0xff] %v818_v15  ;;  %v811_v18 = vmul.f32 %v1745_v24, %v784_v34  ;;  %v812_v55 = vmul.f32 %v1747_v31, %v788_v8  ;;  %v813_v29 = vmul.f32 %v1745_v24, %v785_v40 }
 0x19f   : > { %v814_v11 = vmul.f32 %v1747_v31, %v789_v2 }
 0x1a0   : > { %v819_v50 = vadd.f32 %v811_v18, %v760_v57  ;;  %v820_v49 = vadd.f32 %v812_v55, %v761_v22  ;;  %v821_v3 = vadd.f32 %v813_v29, %v762_v45  ;;  %v781_v53 = vpop.permute.xlu0 %780 }
 0x1a1   : > { %v822_v7 = vadd.f32 %v814_v11, %v763_v46  ;;  %v786_v13 = vsel %vm782_vm3, %v773_v39, %v781_v53  ;;  %v790_v54 = vsel %vm782_vm3, %v781_v53, %v773_v39 }
 0x1a2   : > { %827 = vst [vmem:[%s1789_s8 + $0x10] sm:$0xff] %v819_v50  ;;  %828 = vst [vmem:[%s1789_s8 + $0x18] sm:$0xff] %v820_v49  ;;  %v815_v56 = vmul.f32 %v1745_v24, %v786_v13  ;;  %v816_v62 = vmul.f32 %v1747_v31, %v790_v54 }
 0x1a3   : > { %829 = vst [vmem:[%s1789_s8 + $0x20] sm:$0xff] %v821_v3  ;;  %830 = vst [vmem:[%s1789_s8 + $0x28] sm:$0xff] %v822_v7 }
 0x1a4   : > { %v823_v51 = vadd.f32 %v815_v56, %v764_v41  ;;  %v824_v63 = vadd.f32 %v816_v62, %v765_v38 }
 0x1a6   : > { %831 = vst [vmem:[%s1789_s8 + $0x30] sm:$0xff] %v823_v51  ;;  %832 = vst [vmem:[%s1789_s8 + $0x38] sm:$0xff] %v824_v63 }
 0x1a7   : > { %1128 = shalt.err (!%p1125_p5)
}
 0x1a8   : > { %s1129_s13 = scalar_lea.hbm %s1814_s21, 1024  ;;  %s1133_s7 = scalar_lea.hbm %s1872_s4, 2048 }
 0x1a9   : > { %p1130_p4 = scmp.ne.s32.totalorder %s1814_s21, %s1129_s13  ;;  %p1134_p12 = scmp.lt.u32.totalorder %s1814_s21, %s1872_s4 }
 0x1aa   : > { %p1135_p1 = scmp.lt.u32.totalorder %s1133_s7, %s1129_s13  ;;  %p1137_p8 = scmp.lt.u32.totalorder %s1129_s13, %s1814_s21 }
 0x1ab   : > { %p1131_p7 = pnand %p1130_p4, %p1880_p9 }
 0x1ac   : > { %p1136_p3 = por %p1135_p1, %p1134_p12 }
 0x1ad   : > { %p1132_p10 = pneg %p1131_p7 }
 0x1ae   : > { %p1138_p11 = por %p1137_p8, %p1136_p3 }
 0x1b0   : > { %p1139_p0 = pnand %p1138_p11, %p1132_p10 }
 0x1b2   : > { %1142 = shalt.err (!%p1139_p0)
}
 0x1b3   : > { %s1216_s18 = smov 256  }
 0x1b4   : > { %988 = dma.vmem_to_hbm [thread:$0]  (%p1880_p9), %s1816_s9, 1024, %s1814_s21, %s834_s25, %s1216_s18, %s1216_s18, %s1213_s5  }
 0x1b5 PF: > { %s865_s11 = sand.u32 1, %s1177_s15   ;;  %p1881_p6 = scmp.ne.s32.totalorder %s1877_s30, 0 }
 0x1b6   : > { %p1882_p13 = scmp.ge.s32.totalorder %s1197_s20, 2  ;;  %s866_s26 = scalar_lea.sflag [#allocation4], %s865_s11 }
 0x1b8   : > { %p995_p2 = pnand %p1882_p13, %p1881_p6 }
 0x1ba   : > { %1172 = dma.done.wait (!%p995_p2), %s866_s26, 1024  }
 0x1bb   : > { %1174 = vsyncadd (!%p995_p2), %s866_s26, 4294966272  ;;  %s20_s20 = sadd.s32 1, %s1197_s20   ;;  %s1883_s15 = smov %s1181_s16 }
 0x1bc   : > { %p17_p5 = scmp.ge.s32.totalorder %s20_s20, 4   ;;  %s1884_s16 = smov %s1185_s17 }
 0x1bd   : > { %s1885_s17 = smov %s1298_s29  ;;  %s1886_s18 = smov %s1193_s19 }
 0x1be   : > { %s1887_s19 = smov %s1889_s23  ;;  %19 = sbr.rel (!%p17_p5) target bundleno = 6 (0x6), region = 87 }
 0x1c5   :  { %871 = vsyncpa [#allocation3], 1 }
 0x1c6   :  { %873 = vsyncpa [#allocation3 + $0x1], 1 }
 0x1c7   :  { %874 = vsyncpa [#allocation4], 1 }
 0x1c8   :  { %876 = vsyncpa [#allocation4 + $0x1], 1 }

</bundles_post_ra>
